<compile_context>
chip_gen: v5e
topology: v5e:2x2
jax: 0.10.0
libtpu: 0.0.40
codegen_flags: <defaults>
</compile_context>

<pallas_src>
import jax
import jax.numpy as jnp
from jax.experimental import pallas as pl
from jax.experimental.pallas import tpu as pltpu


# ----------------------------------------------------------------------------
# Kernel
# ----------------------------------------------------------------------------
def _normalize_kernel(x_ref, o_ref):
    # preprocess_obs: cast to float32 and divide by 255.0 (exact parity with
    # PyTorch `obs.float() / 255.0`); cast to output dtype only on store.
    o_ref[...] = (x_ref[...].astype(jnp.float32) / 255.0).astype(o_ref.dtype)


# ----------------------------------------------------------------------------
# Tiling policy
# ----------------------------------------------------------------------------
_VMEM_TILE_BUDGET = 12 << 20   # double-buffered (in+out) bytes per grid step;
                               # fits v5e's 16 MiB default scoped VMEM w/ headroom
_MIN_STEP_OUT = 2 << 20        # don't over-split: >= ~2 MiB of output per step
_ROW_CAP = 1024                # v6e: 512 -> 1024 rows is a small measured win
_TARGET_STEPS = 4              # enough steps for v7x dual-TC + DMA overlap


def _ceil_div(a: int, b: int) -> int:
    return -(-a // b)


def _round_up(x: int, m: int) -> int:
    return _ceil_div(x, m) * m


def _round_down(x: int, m: int) -> int:
    return (x // m) * m


def _choose_tiles(B: int, feat_dim: int, in_bytes: int, out_bytes: int):
    """Pick (tile_rows, tile_cols) for the (B, feat_dim) slab.

    Hard constraints:
      - rows: multiple of 32 or == B (full extent); cols: multiple of 128 or
        == feat_dim.
      - double-buffered in+out per step <= _VMEM_TILE_BUDGET.
    Soft goals:
      - >= ~_TARGET_STEPS grid steps when the slab is big (v7x dual-TC,
        pipelining), but each step moves >= _MIN_STEP_OUT output bytes.
    """
    db = 2 * (in_bytes + out_bytes)          # per-element bytes, double-buffered
    out_row = max(feat_dim * out_bytes, 1)   # output bytes per full-width row

    # ---------------- rows ----------------
    if B <= 32:
        tile_rows = B                        # full extent (always legal)
    else:
        # hard cap: rows that fit the VMEM budget at full column width
        rows_vmem = _round_down(_VMEM_TILE_BUDGET // (feat_dim * db), 32)
        # soft: enough row steps for dual-TC / pipelining
        rows_steps = max(32, _round_down(B // _TARGET_STEPS, 32))
        # soft: keep per-step output >= _MIN_STEP_OUT (don't over-split)
        rows_minbytes = _round_up(_ceil_div(_MIN_STEP_OUT, out_row), 32)
        tile_rows = min(max(rows_steps, rows_minbytes), _ROW_CAP)
        if rows_vmem >= 32:
            tile_rows = min(tile_rows, rows_vmem)   # VMEM cap is hard
        else:
            tile_rows = 32                          # too wide: col-tile below
        if tile_rows >= B:
            tile_rows = B                           # full extent

    # ---------------- cols ----------------
    tile_cols = feat_dim
    per_step_db = tile_rows * feat_dim * db
    row_steps = _ceil_div(B, tile_rows)
    total_out = B * feat_dim * out_bytes

    need_cols_for_vmem = per_step_db > _VMEM_TILE_BUDGET
    # Also col-tile when one row block already covers the whole batch but the
    # slab is big enough that splitting is worth it (small B, wide obs).
    want_cols_for_steps = (
        row_steps == 1
        and total_out >= _TARGET_STEPS * _MIN_STEP_OUT
        and feat_dim >= _TARGET_STEPS * 128
    )
    if need_cols_for_vmem or want_cols_for_steps:
        cols_vmem = max(_round_down(_VMEM_TILE_BUDGET // (tile_rows * db), 128), 128)
        cols_steps = max(128, _round_down(feat_dim // _TARGET_STEPS, 128))
        cols_minbytes = _round_up(_ceil_div(_MIN_STEP_OUT, tile_rows * out_bytes), 128)
        tile_cols = min(max(cols_steps, cols_minbytes), cols_vmem)
        if tile_cols >= feat_dim:
            tile_cols = feat_dim

    return tile_rows, tile_cols


# ----------------------------------------------------------------------------
# Wrapper (== BaseModel.extract_features with the default FlattenExtractor)
# ----------------------------------------------------------------------------
def base_model_extract_features(obs_nchw, normalize_images: bool = True,
                                out_dtype=jnp.float32):
    """Equivalent of BaseModel.extract_features (preprocess + FlattenExtractor).

    obs_nchw: (B, C, H, W) image observation — pass uint8 directly (preferred:
              4x less HBM read traffic) or float in [0, 255].
    out_dtype: jnp.float32 gives exact parity with PyTorch `obs.float()/255`.
               Strongly prefer jnp.bfloat16 when the consumer is a bf16
               matmul: writeback dominates this kernel, and bf16 cuts total
               HBM bytes from 5 to 3 per element (~1.6-1.7x faster) while
               also halving the next layer's LHS read.
    returns:  (B, C*H*W) features in `out_dtype`.
    """
    B = int(obs_nchw.shape[0])
    feat_dim = 1
    for d in obs_nchw.shape[1:]:
        feat_dim *= int(d)

    # Glue: flatten (FlattenExtractor). Reshape stays in plain JAX and keeps
    # the observation's original dtype (do NOT pre-cast to f32).
    obs_flat = obs_nchw.reshape(B, feat_dim)

    if not normalize_images:
        return obs_flat.astype(out_dtype)

    in_bytes = jnp.dtype(obs_flat.dtype).itemsize
    out_bytes = jnp.dtype(out_dtype).itemsize
    tile_rows, tile_cols = _choose_tiles(B, feat_dim, in_bytes, out_bytes)
    grid = (pl.cdiv(B, tile_rows), pl.cdiv(feat_dim, tile_cols))

    # Explicit scoped-VMEM limit: double-buffered in+out tiles + headroom.
    # Always <= ~14 MiB by construction, so it is valid on v5e/v6e/v7x and
    # never silently forces the compiler to shrink buffers for wide obs.
    in_tile = tile_rows * tile_cols * in_bytes
    out_tile = tile_rows * tile_cols * out_bytes
    vmem_limit = max(2 * (in_tile + out_tile) + (2 << 20), 8 << 20)

    out = pl.pallas_call(
        _normalize_kernel,
        out_shape=jax.ShapeDtypeStruct((B, feat_dim), out_dtype),
        grid_spec=pl.GridSpec(
            grid=grid,
            in_specs=[pl.BlockSpec((tile_rows, tile_cols), lambda i, j: (i, j))],
            out_specs=pl.BlockSpec((tile_rows, tile_cols), lambda i, j: (i, j)),
        ),
        compiler_params=pltpu.CompilerParams(
            # Elementwise op: both axes independent — lets v7x shard across
            # its 2 TensorCores (no-op on single-TC v5e/v6e).
            dimension_semantics=("parallel", "parallel"),
            vmem_limit_bytes=int(vmem_limit),
        ),
    )(obs_flat)
    return out


# TODO(synk): BaseModel.forward is @abstractmethod (no body); only
# extract_features (preprocess + FlattenExtractor) has concrete compute.
# Save/load/optimizer/constructor plumbing has no Pallas equivalent.


if __name__ == "__main__":
    key = jax.random.PRNGKey(0)

    # --- small shape consistent with the module (image obs, NCHW) ---
    B, C, H, W = 2, 4, 16, 16
    obs = jax.random.randint(key, (B, C, H, W), 0, 256,
                             dtype=jnp.int32).astype(jnp.uint8)

    # f32 path: exact parity with PyTorch obs.float()/255.0
    feats = jax.block_until_ready(
        base_model_extract_features(obs, normalize_images=True,
                                    out_dtype=jnp.float32))
    ref = (obs.astype(jnp.float32) / 255.0).reshape(B, C * H * W)
    assert feats.shape == (B, C * H * W)
    assert feats.dtype == jnp.float32
    assert float(jnp.max(jnp.abs(feats - ref))) < 1e-6

    # bf16 path: recommended when the consumer is a bf16 matmul (writeback
    # dominates; bf16 cuts HBM bytes 5 -> 3 per element).
    feats_bf16 = jax.block_until_ready(
        base_model_extract_features(obs, normalize_images=True,
                                    out_dtype=jnp.bfloat16))
    ref_bf16 = ref.astype(jnp.bfloat16).astype(jnp.float32)
    assert feats_bf16.dtype == jnp.bfloat16
    assert float(jnp.max(jnp.abs(feats_bf16.astype(jnp.float32) - ref_bf16))) <= 1.0 / 128.0

    # Ragged batch (B not a multiple of the 32-row tile) + multi-step grid,
    # exercising Pallas masking of the partial last row block.
    B2, C2, H2, W2 = 40, 4, 64, 64
    obs2 = jax.random.randint(jax.random.PRNGKey(0), (B2, C2, H2, W2), 0, 256,
                              dtype=jnp.int32).astype(jnp.uint8)
    feats2 = jax.block_until_ready(
        base_model_extract_features(obs2, normalize_images=True,
                                    out_dtype=jnp.float32))
    ref2 = (obs2.astype(jnp.float32) / 255.0).reshape(B2, C2 * H2 * W2)
    assert feats2.shape == (B2, C2 * H2 * W2)
    assert float(jnp.max(jnp.abs(feats2 - ref2))) < 1e-6

    print("KERNEL_OK")
</pallas_src>

<mosaic_0001>
module attributes {stable_mosaic.version = 11 : i64} {
  func.func @_normalize_kernel(%arg0: i32, %arg1: i32, %arg2: memref<2x1024xi8, #tpu.memory_space<vmem>>, %arg3: memref<2x1024xf32, #tpu.memory_space<vmem>>) attributes {dimension_semantics = [#tpu.dimension_semantics<parallel>, #tpu.dimension_semantics<parallel>], iteration_bounds = array<i64: 1, 1>, scalar_prefetch = 0 : i64, scratch_operands = 0 : i64, tpu.core_type = #tpu.core_type<tc>, window_params = [{transform_indices = @transform_0, window_bounds = array<i64: 2, 1024>}, {transform_indices = @transform_1, window_bounds = array<i64: 2, 1024>}]} {
    %c0 = arith.constant 0 : index
    %c0_0 = arith.constant 0 : index
    %0 = vector.load %arg2[%c0, %c0_0] : memref<2x1024xi8, #tpu.memory_space<vmem>>, vector<2x1024xi8>
    %1 = arith.uitofp %0 : vector<2x1024xi8> to vector<2x1024xf32>
    %cst = arith.constant 2.550000e+02 : f32
    %2 = vector.broadcast %cst : f32 to vector<2x1024xf32>
    %3 = arith.divf %1, %2 : vector<2x1024xf32>
    %c0_1 = arith.constant 0 : index
    %c0_2 = arith.constant 0 : index
    %4 = vector.load %arg3[%c0_1, %c0_2] : memref<2x1024xf32, #tpu.memory_space<vmem>>, vector<2x1024xf32>
    tpu.vector_store %arg3[%c0_1, %c0_2], %3 {strides = array<i32>} : memref<2x1024xf32, #tpu.memory_space<vmem>>, vector<2x1024xf32>,
    return
  }
  func.func @transform_0(%arg0: i32, %arg1: i32) -> (i32, i32) {
    %c0_i32 = arith.constant 0 : i32
    return %arg0, %arg1 : i32, i32
  }
  func.func @transform_1(%arg0: i32, %arg1: i32) -> (i32, i32) {
    %c0_i32 = arith.constant 0 : i32
    return %arg0, %arg1 : i32, i32
  }
}

</mosaic_0001>

<bundles_post_ra>
// kernel: tpu_custom_call.1
= control target key start
LH: loop header
LB: loop body
LE: loop exit
PB: predicated region body
PF: predicated region fallthrough
CT: control target
= control target key end

     0   :  { %6 = vsyncpa [#allocation3], 0  ;;  %s165_s0 = inlined_call_operand.hbm [shape: u8[2,1024], index: 0, kind: input, shape index: {}]   ;;  %s166_s1 = inlined_call_operand.hbm [shape: f32[2,1024], index: 1, kind: output, shape index: {}]  }
   0x1   :  { %7 = vsyncpa [#allocation4], 0  ;;  %s13_s8 = sshll.u32 %s165_s0, 4  ;;  %s144_s9 = smov [#allocation2]   ;;  %s14_s8 = int_to_ptr.hbm [resolvable:$true] %s13_s8 }
   0x2   :  { %s15_s10 = sshll.u32 %s144_s9, 4  ;;  %s16_s10 = int_to_ptr.vmem [resolvable:$true] %s15_s10 }
   0x3   :  { %18 = dma.hbm_to_vmem [thread:$0]  %s14_s8, 128, %s16_s10, [#allocation3]  }
   0x4   :  { %140 = dma.done.wait [#allocation3], 128  }
   0x5   :  { %141 = vsyncadd [#allocation3], 4294967168  ;;  %v145_v0 = vmov 255.0   ;;  %v23_v2 = vld [vmem:[#allocation2] sm:$0xff]  ;;  %vm57_vm1 = vcmask 1041408   ;;  %vm59_vm2 = vcmask 1045508  }
   0x6   :  { %90 = vrcp.f32 %v145_v0  ;;  %v24_v3 = vunpack.c.0.s8 %v23_v2  ;;  %v25_v4 = vunpack.c.1.s8 %v23_v2  ;;  %v26_v6 = vunpack.c.2.s8 %v23_v2  ;;  %s146_s0 = smov [#allocation5]   ;;  %s77_s14 = sshll.u32 %s166_s1, 4  ;;  %s78_s14 = int_to_ptr.hbm [resolvable:$true] %s77_s14 }
   0x7   :  { %v27_v7 = vunpack.c.3.s8 %v23_v2  ;;  %vm61_vm3 = vcmask 1043456   ;;  %s75_s11 = sshll.u32 %s146_s0, 4  ;;  %s76_s11 = int_to_ptr.vmem [resolvable:$true] %s75_s11 }
   0x8   :  { %v28_v8 = vand.u32 255, %v24_v3  ;;  %v29_v9 = vand.u32 255, %v25_v4  ;;  %v30_v11 = vand.u32 255, %v26_v6 }
   0x9   :  { %v31_v12 = vand.u32 255, %v27_v7 }
   0xa   :  { %v32_v14 = vcvt.s32.f32 %v28_v8  ;;  %v33_v15 = vcvt.s32.f32 %v29_v9  ;;  %v34_v16 = vcvt.s32.f32 %v30_v11 }
   0xb   :  { %v35_v17 = vcvt.s32.f32 %v31_v12 }
   0xc   :  { %v91_v1 = vpop.eup %90 }
   0xd   :  { %v37_v5 = vmul.f32 255.0, %v91_v1  ;;  %vm41_vm0 = vweird.f32 %v91_v1 }
   0xf   :  { %v38_v10 = vsub.f32 1.0, %v37_v5 }
  0x11   :  { %v39_v13 = vmul.f32 %v91_v1, %v38_v10 }
  0x13   :  { %v40_v18 = vadd.f32 %v91_v1, %v39_v13 }
  0x15   :  { %v42_v19 = vsel %vm41_vm0, %v91_v1, %v40_v18 }
  0x16   :  { %v43_v20 = vmul.f32 %v42_v19, %v32_v14  ;;  %v44_v21 = vmul.f32 %v42_v19, %v33_v15  ;;  %v45_v22 = vmul.f32 %v42_v19, %v34_v16  ;;  %v46_v23 = vmul.f32 %v42_v19, %v35_v17 }
  0x18   :  { %v51_v24 = vrot.slane %v43_v20, 2  ;;  %v52_v25 = vrot.slane %v44_v21, 4  ;;  %v53_v26 = vrot.slane %v44_v21, 6  ;;  %v54_v27 = vrot.slane %v45_v22, 2 }
  0x19   :  { %v55_v28 = vrot.slane %v46_v23, 4  ;;  %v56_v29 = vrot.slane %v46_v23, 6 }
  0x1a   :  { %v58_v30 = vsel %vm57_vm1, %v43_v20, %v51_v24  ;;  %v60_v31 = vsel %vm59_vm2, %v52_v25, %v53_v26  ;;  %v63_v32 = vsel %vm57_vm1, %v45_v22, %v54_v27 }
  0x1b   :  { %v62_v33 = vsel %vm61_vm3, %v58_v30, %v60_v31  ;;  %v64_v34 = vsel %vm59_vm2, %v55_v28, %v56_v29 }
  0x1c   :  { %68 = vst [vmem:[#allocation5] sm:$0xff] %v62_v33  ;;  %v65_v35 = vsel %vm61_vm3, %v63_v32, %v64_v34 }
  0x1d   :  { %69 = vst [vmem:[#allocation5 + $0x8] sm:$0xff] %v65_v35 }
  0x1e   :  { %80 = dma.vmem_to_hbm [thread:$0]  %s76_s11, 256, %s78_s14, [#allocation4]  }
  0x1f   :  { %142 = dma.done.wait [#allocation4], 256  }
  0x20   :  { %143 = vsyncadd [#allocation4], 4294967040 }
  0x21   :  { %85 = vsyncpa [#allocation3], 1 }
  0x22   :  { %86 = vsyncpa [#allocation4], 1 }

</bundles_post_ra>
